<compile_context>
chip_gen: v6e
topology: v6e:2x2x1
jax: 0.10.0
libtpu: 0.0.40
codegen_flags: <defaults>
</compile_context>

<pallas_src>
import jax
import jax.numpy as jnp
from jax.experimental import pallas as pl
from jax.experimental.pallas import tpu as pltpu


def _predictor_kernel(zs_ref, zd_ref, ws_ref, wd_ref, b_ref, out_ref):
    """One grid step: out[:, i*T:(i+1)*T] = W_src @ zs + W_dst @ zd + b.

    zs_ref, zd_ref : [F, tile_n]   (features on sublanes, rows on lanes)
    ws_ref, wd_ref : [C, F]        (native PyTorch weight halves, no .T needed)
    b_ref          : [C, 1]
    out_ref        : [C, tile_n]   (lane-dense output tile)
    """
    acc = jnp.dot(ws_ref[...], zs_ref[...], preferred_element_type=jnp.float32)
    acc = acc + jnp.dot(wd_ref[...], zd_ref[...], preferred_element_type=jnp.float32)
    out_ref[...] = (acc + b_ref[...]).astype(out_ref.dtype)


def _choose_tile_n(n, max_tile=2048):
    """Largest lane-aligned (multiple of 128) tile dividing n, preferring >=2 grid
    steps (keeps both v7x TensorCores busy); falls back to a full-extent block."""
    single_step = None
    t = min(max_tile, (n // 128) * 128)
    while t >= 128:
        if n % t == 0:
            if n // t >= 2:
                return t
            if single_step is None:
                single_step = t
        t -= 128
    return single_step if single_step is not None else n


def mlp_predictor_forward(z_src, z_dst, w, b, *, tile_n=None):
    """Fused Pallas forward of MLPPredictor.

    z_src, z_dst : [N, F] float32
    w            : [C, 2F] float32   (PyTorch nn.Linear weight layout)
    b            : [C]     float32
    returns      : [N, C]  float32
    """
    N, F = z_src.shape
    assert z_dst.shape == (N, F)
    C, two_f = w.shape
    assert two_f == 2 * F, "weight must have in_features*2 columns"

    if tile_n is None:
        tile_n = _choose_tile_n(N)
    assert N % tile_n == 0, "batch must be divisible by tile_n"
    assert tile_n % 128 == 0 or tile_n == N, "tile_n must be lane-aligned (x128) or full extent"

    # Host-side layout plumbing (no per-step in-kernel transposes):
    zs_t = z_src.T                      # [F, N]  rows on the lane axis
    zd_t = z_dst.T                      # [F, N]
    w_src = w[:, :F]                    # [C, F]  -> used directly as matmul LHS
    w_dst = w[:, F:]                    # [C, F]
    b2 = b.reshape(C, 1)                # [C, 1]  broadcast over lanes

    grid = (N // tile_n,)

    fn = pl.pallas_call(
        _predictor_kernel,
        out_shape=jax.ShapeDtypeStruct((C, N), z_src.dtype),
        grid_spec=pltpu.PrefetchScalarGridSpec(
            num_scalar_prefetch=0,
            grid=grid,
            in_specs=[
                pl.BlockSpec((F, tile_n), lambda i: (0, i)),   # z_src^T tile
                pl.BlockSpec((F, tile_n), lambda i: (0, i)),   # z_dst^T tile
                pl.BlockSpec((C, F), lambda i: (0, 0)),        # W_src (resident)
                pl.BlockSpec((C, F), lambda i: (0, 0)),        # W_dst (resident)
                pl.BlockSpec((C, 1), lambda i: (0, 0)),        # bias  (resident)
            ],
            out_specs=pl.BlockSpec((C, tile_n), lambda i: (0, i)),
        ),
        compiler_params=pltpu.CompilerParams(
            dimension_semantics=("parallel",),
            # Explicit cap with headroom below v7x's 64 MiB VMEM; actual
            # footprint here is <1 MiB even at tile_n=2048.
            vmem_limit_bytes=48 * 1024 * 1024,
        ),
    )
    out_t = fn(zs_t, zd_t, w_src, w_dst, b2)    # [C, N]
    return out_t.T                              # [N, C] (PyTorch semantics)


def predictor_reference(z_src, z_dst, w, b):
    """Pure-JAX reference of the PyTorch forward pass."""
    return jnp.concatenate([z_src, z_dst], axis=1) @ w.T + b


if __name__ == "__main__":
    # Small shapes consistent with the module: in_features=16, out_classes=8,
    # a batch of 512 (src, dst) embedding pairs.
    in_features, out_classes = 16, 8
    N = 512

    key = jax.random.PRNGKey(0)
    k_src, k_dst, k_w, k_b = jax.random.split(key, 4)
    z_src = jax.random.normal(k_src, (N, in_features), dtype=jnp.float32)
    z_dst = jax.random.normal(k_dst, (N, in_features), dtype=jnp.float32)

    bound = 1.0 / jnp.sqrt(2 * in_features)
    w = jax.random.uniform(k_w, (out_classes, 2 * in_features), jnp.float32, -bound, bound)
    b = jax.random.uniform(k_b, (out_classes,), jnp.float32, -bound, bound)

    out = mlp_predictor_forward(z_src, z_dst, w, b)   # auto tile_n=256 -> grid of 2
    out = jax.block_until_ready(out)

    ref = predictor_reference(z_src, z_dst, w, b)
    assert out.shape == (N, out_classes)
    assert jnp.allclose(out, ref, atol=1e-5, rtol=1e-5), "mismatch vs reference"

    print("KERNEL_OK")
</pallas_src>

<mosaic_0001>
module attributes {stable_mosaic.version = 11 : i64} {
  func.func @_predictor_kernel(%arg0: i32, %arg1: memref<16x256xf32, #tpu.memory_space<vmem>>, %arg2: memref<16x256xf32, #tpu.memory_space<vmem>>, %arg3: memref<8x16xf32, #tpu.memory_space<vmem>>, %arg4: memref<8x16xf32, #tpu.memory_space<vmem>>, %arg5: memref<8x1xf32, #tpu.memory_space<vmem>>, %arg6: memref<8x256xf32, #tpu.memory_space<vmem>>) attributes {dimension_semantics = [#tpu.dimension_semantics<parallel>], iteration_bounds = array<i64: 2>, scalar_prefetch = 0 : i64, scratch_operands = 0 : i64, tpu.core_type = #tpu.core_type<tc>, window_params = [{transform_indices = @transform_0, window_bounds = array<i64: 16, 256>}, {transform_indices = @transform_1, window_bounds = array<i64: 16, 256>}, {pipeline_mode = #tpu.pipeline_mode<synchronous>, transform_indices = @transform_2, window_bounds = array<i64: 8, 16>}, {pipeline_mode = #tpu.pipeline_mode<synchronous>, transform_indices = @transform_3, window_bounds = array<i64: 8, 16>}, {pipeline_mode = #tpu.pipeline_mode<synchronous>, transform_indices = @transform_4, window_bounds = array<i64: 8, 1>}, {transform_indices = @transform_5, window_bounds = array<i64: 8, 256>}]} {
    %c0 = arith.constant 0 : index
    %c0_0 = arith.constant 0 : index
    %0 = vector.load %arg3[%c0, %c0_0] : memref<8x16xf32, #tpu.memory_space<vmem>>, vector<8x16xf32>
    %c0_1 = arith.constant 0 : index
    %c0_2 = arith.constant 0 : index
    %1 = vector.load %arg1[%c0_1, %c0_2] : memref<16x256xf32, #tpu.memory_space<vmem>>, vector<16x256xf32>
    %cst = arith.constant dense<0.000000e+00> : vector<8x256xf32>
    %2 = tpu.matmul %0, %1, %cst {dimension_numbers = #tpu.dot_dimension_numbers<[1], [0], [0], [1], [0, 0, 1, 1], [], []>} : vector<8x16xf32>, vector<16x256xf32>, vector<8x256xf32> -> vector<8x256xf32>
    %c0_3 = arith.constant 0 : index
    %c0_4 = arith.constant 0 : index
    %3 = vector.load %arg4[%c0_3, %c0_4] : memref<8x16xf32, #tpu.memory_space<vmem>>, vector<8x16xf32>
    %c0_5 = arith.constant 0 : index
    %c0_6 = arith.constant 0 : index
    %4 = vector.load %arg2[%c0_5, %c0_6] : memref<16x256xf32, #tpu.memory_space<vmem>>, vector<16x256xf32>
    %cst_7 = arith.constant dense<0.000000e+00> : vector<8x256xf32>
    %5 = tpu.matmul %3, %4, %cst_7 {dimension_numbers = #tpu.dot_dimension_numbers<[1], [0], [0], [1], [0, 0, 1, 1], [], []>} : vector<8x16xf32>, vector<16x256xf32>, vector<8x256xf32> -> vector<8x256xf32>
    %6 = arith.addf %2, %5 : vector<8x256xf32>
    %c0_8 = arith.constant 0 : index
    %c0_9 = arith.constant 0 : index
    %7 = vector.load %arg5[%c0_8, %c0_9] : memref<8x1xf32, #tpu.memory_space<vmem>>, vector<8x1xf32>
    %8 = vector.broadcast %7 : vector<8x1xf32> to vector<8x256xf32>
    %9 = arith.addf %6, %8 : vector<8x256xf32>
    %c0_10 = arith.constant 0 : index
    %c0_11 = arith.constant 0 : index
    %10 = vector.load %arg6[%c0_10, %c0_11] : memref<8x256xf32, #tpu.memory_space<vmem>>, vector<8x256xf32>
    tpu.vector_store %arg6[%c0_10, %c0_11], %9 {strides = array<i32>} : memref<8x256xf32, #tpu.memory_space<vmem>>, vector<8x256xf32>,
    return
  }
  func.func @transform_0(%arg0: i32) -> (i32, i32) {
    %c0_i32 = arith.constant 0 : i32
    %c0_i32_0 = arith.constant 0 : i32
    return %c0_i32, %arg0 : i32, i32
  }
  func.func @transform_1(%arg0: i32) -> (i32, i32) {
    %c0_i32 = arith.constant 0 : i32
    %c0_i32_0 = arith.constant 0 : i32
    return %c0_i32, %arg0 : i32, i32
  }
  func.func @transform_2(%arg0: i32) -> (i32, i32) {
    %c0_i32 = arith.constant 0 : i32
    %c0_i32_0 = arith.constant 0 : i32
    %c0_i32_1 = arith.constant 0 : i32
    return %c0_i32, %c0_i32_0 : i32, i32
  }
  func.func @transform_3(%arg0: i32) -> (i32, i32) {
    %c0_i32 = arith.constant 0 : i32
    %c0_i32_0 = arith.constant 0 : i32
    %c0_i32_1 = arith.constant 0 : i32
    return %c0_i32, %c0_i32_0 : i32, i32
  }
  func.func @transform_4(%arg0: i32) -> (i32, i32) {
    %c0_i32 = arith.constant 0 : i32
    %c0_i32_0 = arith.constant 0 : i32
    %c0_i32_1 = arith.constant 0 : i32
    return %c0_i32, %c0_i32_0 : i32, i32
  }
  func.func @transform_5(%arg0: i32) -> (i32, i32) {
    %c0_i32 = arith.constant 0 : i32
    %c0_i32_0 = arith.constant 0 : i32
    return %c0_i32, %arg0 : i32, i32
  }
}

</mosaic_0001>

<bundles_post_ra>
// kernel: tpu_custom_call.1
= control target key start
LH: loop header
LB: loop body
LE: loop exit
PB: predicated region body
PF: predicated region fallthrough
CT: control target
= control target key end

     0   :  { %s1101_s0 = inlined_call_operand.hbm [shape: f32[16,512], index: 0, kind: input, shape index: {}]   ;;  %s1102_s1 = inlined_call_operand.hbm [shape: f32[16,512], index: 1, kind: input, shape index: {}]   ;;  %s1103_s2 = inlined_call_operand.vmem [shape: f32[8,16], index: 2, kind: input, shape index: {}]   ;;  %s1104_s3 = inlined_call_operand.hbm [shape: f32[8,16], index: 3, kind: input, shape index: {}]   ;;  %s1105_s4 = inlined_call_operand.vmem [shape: f32[8,1], index: 4, kind: input, shape index: {}]   ;;  %s1106_s5 = inlined_call_operand.hbm [shape: f32[8,512], index: 5, kind: output, shape index: {}]  }
   0x1   :  { %1110 = sst [smem:[#allocation14_spill]] %s1101_s0 }
   0x2   :  { %1111 = sst [smem:[#allocation15_spill]] %s1104_s3 }
   0x3   :  { %10 = vsyncpa [#allocation3], 0 }
   0x4   :  { %12 = vsyncpa [#allocation3 + $0x1], 0 }
   0x5   :  { %13 = vsyncpa [#allocation6], 0 }
   0x6   :  { %15 = vsyncpa [#allocation6 + $0x1], 0 }
   0x7   :  { %16 = vsyncpa [#allocation4], 0 }
   0x8   :  { %18 = vsyncpa [#allocation4 + $0x1], 0  ;;  %s872_s18 = smov 0   ;;  %s874_s19 = smov 0  }
   0x9   :  { %s876_s20 = smov 0   ;;  %s878_s21 = smov 0  }
   0xa LB: > { %s893_s22 = sadd.s32 4294967295, %s831_s21   ;;  %s584_s23 = sadd.s32 4294967294, %s831_s21   ;;  %s831_s21 = sphi %s878_s21, %s1133_s21   ;;  %s827_s20 = sphi %s876_s20, %s1132_s20   ;;  %s823_s19 = sphi %s874_s19, %s1131_s19   ;;  %s819_s18 = sphi %s872_s18, %s1130_s18  }
   0xb   : > { %s897_s24 = sadd.s32 1, %s831_s21   ;;  %s31_s25 = sadd.s32 1, %s827_s20 }
   0xc   : > { %s28_s26 = ssub.s32 %s831_s21, %s897_s24  ;;  %p38_p0 = scmp.ne.s32.totalorder %s827_s20, %s823_s19 }
   0xd   : > { %p29_p1 = scmp.eq.s32.totalorder %s28_s26, 0  ;;  %p39_p2 = scmp.eq.s32.totalorder %s831_s21, 0 }
   0xe   : > { %p44_p3 = scmp.ne.s32.totalorder %s823_s19, %s819_s18  ;;  %p1107_p4 = scmp.eq.s32.totalorder %s893_s22, 0 }
   0xf   : > { %s909_s27 = scalar_select %p29_p1, %s827_s20, %s31_s25  }
  0x10   : > { %p911_p5 = por %p39_p2, %p38_p0  ;;  %p917_p6 = por %p1107_p4, %p44_p3 }
  0x11   : > { %1112 = sst [smem:[#allocation13_spill]] %s909_s27  ;;  %p157_p7 = scmp.eq.s32.totalorder %s893_s22, 1 }
  0x12   : > { %s1114_s29 = scalar_select %p917_p6, 1, 0 }
  0x13   : > { %p163_p8 = scmp.eq.s32.totalorder %s584_s23, 1  ;;  %p585_p9 = scmp.ge.s32.totalorder %s831_s21, 1 }
  0x14   : > { %p170_p10 = scmp.lt.s32.totalorder %s831_s21, 3  ;;  %p924_p11 = por %p157_p7, %p38_p0 }
  0x15   : > { %p928_p12 = por %p163_p8, %p44_p3  ;;  %s833_s8 = smov [#allocation7]  }
  0x16   : > { %s1115_s30 = scalar_select %p924_p11, 1, 0 }
  0x17   : > { %s1116_s6 = scalar_select %p928_p12, 1, 0 }
  0x18   : > { %p932_p13 = pnand %p585_p9, %p170_p10  ;;  %s186_s9 = sshll.u32 %s833_s8, 4  ;;  %s187_s9 = int_to_ptr.vmem [resolvable:$true] %s186_s9 }
  0x19   : > { %p635_p4 = scmp.lt.s32.totalorder %s831_s21, 2  ;;  %p1118_p0 = scmp.eq.s32.totalorder %s893_s22, 0 }
  0x1a   : > { %p619_p2 = pneg %p932_p13  ;;  %s200_s11 = sand.u32 1, %s827_s20  }
  0x1b   : > { %p949_p3 = pnand %p635_p4, %p911_p5  ;;  %s953_s13 = sshll.u32 %s200_s11, 5 }
  0x1c   : > { %p942_p7 = pnand %p619_p2, %p1118_p0  ;;  %s688_s14 = scalar_lea.vmem %s187_s9, 128 }
  0x1d   : > { %p689_p9 = scmp.ne.s32.totalorder %s187_s9, %s688_s14  ;;  %p696_p12 = scmp.lt.s32.totalorder %s187_s9, %s187_s9 }
  0x1e   : > { %p679_p8 = pneg %p942_p7  ;;  %p697_p2 = scmp.lt.s32.totalorder %s688_s14, %s688_s14 }
  0x20   : > { %p691_p10 = pnand %p689_p9, %p679_p8  ;;  %p698_p0 = por %p697_p2, %p696_p12 }
  0x22   : > { %p692_p1 = pneg %p691_p10 }
  0x24   : > { %p699_p11 = pnand %p698_p0, %p692_p1 }
  0x26   : > { %702 = shalt.err (!%p699_p11)
}
  0x27   : > { %s1121_s3 = sld [smem:[#allocation15_spill]]  ;;  %s606_s17 = sshll.u32 %s831_s21, 8 }
  0x28   : > { %s204_s23 = scalar_lea.vmem [#allocation2], %s953_s13  ;;  %s1122_s0 = sld [smem:[#allocation14_spill]] }
  0x29   : > { %s211_s25 = sshll.u32 %s204_s23, 4  ;;  %s973_s10 = scalar_lea.sflag [#allocation3], %s200_s11  ;;  %s971_s25 = int_to_ptr.vmem [resolvable:$true] %s211_s25 }
  0x2a   : > { %p705_p5 = pneg %p949_p3 }
  0x2d   : > { %622 = dma.hbm_to_vmem [thread:$0]  (!%p942_p7), %s1121_s3, 128, %s187_s9, [#allocation6]  }
  0x2e   : > { %s969_s8 = scalar_lea.hbm %s1122_s0, %s606_s17  ;;  %s708_s16 = scalar_lea.hbm %s1122_s0, 1024 }
  0x2f   : > { %s703_s14 = scalar_lea.hbm %s969_s8, 512  ;;  %p709_p1 = scmp.lt.s32.totalorder %s969_s8, %s1122_s0 }
  0x30   : > { %p704_p4 = scmp.ne.s32.totalorder %s969_s8, %s703_s14  ;;  %p710_p7 = scmp.lt.s32.totalorder %s708_s16, %s703_s14 }
  0x32   : > { %p706_p11 = pnand %p705_p5, %p704_p4  ;;  %p711_p8 = por %p710_p7, %p709_p1 }
  0x34   : > { %p707_p12 = pneg %p706_p11 }
  0x36   : > { %p712_p9 = pnand %p711_p8, %p707_p12 }
  0x38   : > { %715 = shalt.err (!%p712_p9)
}
  0x39   : > { %s716_s11 = scalar_lea.vmem %s971_s25, 512  ;;  %s834_s28 = smov [#allocation2]  }
  0x3a   : > { %p717_p10 = scmp.ne.s32.totalorder %s971_s25, %s716_s11  ;;  %s721_s9 = sshll.u32 %s834_s28, 4  ;;  %s722_s9 = int_to_ptr.vmem [resolvable:$false] %s721_s9 }
  0x3b   : > { %s723_s15 = scalar_lea.vmem %s722_s9, 1024  ;;  %p724_p4 = scmp.lt.s32.totalorder %s971_s25, %s722_s9 }
  0x3c   : > { %p719_p2 = pnand %p717_p10, %p705_p5  ;;  %p725_p11 = scmp.lt.s32.totalorder %s723_s15, %s716_s11 }
  0x3e   : > { %p720_p0 = pneg %p719_p2  ;;  %p726_p6 = por %p725_p11, %p724_p4 }
  0x40   : > { %p727_p1 = pnand %p726_p6, %p720_p0 }
  0x42   : > { %730 = shalt.err (!%p727_p1)
}
  0x43   : > { %s835_s14 = smov 512   ;;  %s836_s16 = smov 256  }
  0x44   : > { %s837_s23 = smov 16   ;;  %s1008_s28 = scalar_lea.hbm %s1102_s1, %s606_s17 }
  0x45   : > { %626 = dma.hbm_to_vmem [thread:$0]  (!%p949_p3), %s969_s8, 512, %s971_s25, %s973_s10, %s835_s14, %s836_s16, %s837_s23  }
  0x46   : > { %s225_s9 = scalar_lea.vmem [#allocation5], %s953_s13  ;;  %s221_s0 = sand.u32 1, %s831_s21  }
  0x47   : > { %s232_s15 = sshll.u32 %s225_s9, 4  ;;  %s222_s3 = scalar_lea.sflag [#allocation6], %s221_s0  ;;  %s1011_s15 = int_to_ptr.vmem [resolvable:$true] %s232_s15 }
  0x48   : > { %s731_s27 = scalar_lea.hbm %s1008_s28, 512  ;;  %s736_s17 = scalar_lea.hbm %s1102_s1, 1024 }
  0x49   : > { %p732_p6 = scmp.ne.s32.totalorder %s1008_s28, %s731_s27  ;;  %p737_p8 = scmp.lt.s32.totalorder %s1008_s28, %s1102_s1 }
  0x4a   : > { %p738_p9 = scmp.lt.s32.totalorder %s736_s17, %s731_s27 }
  0x4b   : > { %p734_p12 = pnand %p732_p6, %p705_p5 }
  0x4c   : > { %p739_p10 = por %p738_p9, %p737_p8 }
  0x4d   : > { %p735_p7 = pneg %p734_p12 }
  0x4f   : > { %p740_p2 = pnand %p739_p10, %p735_p7 }
  0x51   : > { %743 = shalt.err (!%p740_p2)
}
  0x52   : > { %s744_s0 = scalar_lea.vmem %s1011_s15, 512  ;;  %s838_s13 = smov [#allocation5]  }
  0x53   : > { %p745_p0 = scmp.ne.s32.totalorder %s1011_s15, %s744_s0  ;;  %s749_s11 = sshll.u32 %s838_s13, 4  ;;  %s750_s11 = int_to_ptr.vmem [resolvable:$false] %s749_s11 }
  0x54   : > { %s751_s9 = scalar_lea.vmem %s750_s11, 1024  ;;  %p752_p1 = scmp.lt.s32.totalorder %s1011_s15, %s750_s11 }
  0x55   : > { %p747_p4 = pnand %p745_p0, %p705_p5  ;;  %p753_p6 = scmp.lt.s32.totalorder %s751_s9, %s744_s0 }
  0x57   : > { %p748_p11 = pneg %p747_p4  ;;  %p754_p12 = por %p753_p6, %p752_p1 }
  0x59   : > { %p755_p8 = pnand %p754_p12, %p748_p11 }
  0x5b   : > { %758 = shalt.err (!%p755_p8)
}
  0x5c   : > { %629 = dma.hbm_to_vmem [thread:$0]  (!%p949_p3), %s1008_s28, 512, %s1011_s15, %s222_s3, %s835_s14, %s836_s16, %s837_s23  }
  0x5d   : > { %244 = sbr.rel (%p932_p13) target bundleno = 324 (0x144), region = 40  ;;  %s1042_s27 = sand.u32 (!%p932_p13), 1, %s823_s19  }
  0x5e   : > { %s595_s25 = sshll.u32 (!%p932_p13), %s1042_s27, 5  ;;  %s247_s8 = scalar_lea.sflag (!%p932_p13), [#allocation3], %s1042_s27 }
  0x5f   : > { %s250_s17 = scalar_lea.vmem (!%p932_p13), [#allocation2], %s595_s25  ;;  %p1123_p5 = scmp.ne.s32.totalorder (!%p932_p13), %s1114_s29, 0 }
  0x62   : > { %802 = dma.done.wait (%p1123_p5), %s247_s8, 512  }
  0x63   : > { %804 = vsyncadd (%p1123_p5), %s247_s8, 4294966784  ;;  %s255_s3 = sand.u32 1, %s893_s22   ;;  %s259_s7 = scalar_lea.vmem [#allocation5], %s595_s25 }
  0x64   : > { %s256_s12 = scalar_lea.sflag [#allocation6], %s255_s3 }
  0x65   : > { %806 = dma.done.wait (%p1123_p5), %s256_s12, 512  }
  0x66   : > { %808 = vsyncadd (%p1123_p5), %s256_s12, 4294966784  ;;  %p1124_p13 = scmp.eq.s32.totalorder %s893_s22, 0 }
  0x68   : > { %810 = dma.done.wait (%p1124_p13), [#allocation6], 128   ;;  %p1125_p3 = pmov %p1124_p13 }
  0x69   : > { %v839_v0 = vmov 0.0   ;;  %v840_v1 = vmov 0   ;;  %v307_v2 = vld [vmem:[%s259_s7 + $0x18] sm:$0xff]  ;;  %v306_v4 = vld [vmem:[%s259_s7 + $0x10] sm:$0xff]  ;;  %v305_v6 = vld [vmem:[%s259_s7 + $0x8] sm:$0xff]  ;;  %vm308_vm0 = vcmask 130048  }
  0x6a   : > { %812 = vsyncadd (%p1125_p3), [#allocation6], 4294967168  ;;  %376 = vmatprep.mubr.f32.mxu0 %v839_v0  ;;  %450 = vmatprep.mubr.f32.mxu1 %v839_v0  ;;  %v302_v3 = vld [vmem:[%s250_s17 + $0x18] sm:$0xff]  ;;  %v301_v5 = vld [vmem:[%s250_s17 + $0x10] sm:$0xff]  ;;  %s598_s28 = sshll.u32 %s1042_s27, 4  ;;  %s608_s15 = sshll.u32 %s893_s22, 8 }
  0x6b   : > { %676 = vset.pattern.permute.xlu0 %v840_v1  ;;  %340 = vmatprep.subr.mxu0 %v307_v2  ;;  %v300_v7 = vld [vmem:[%s250_s17 + $0x8] sm:$0xff]  ;;  %v304_v8 = vld [vmem:[%s259_s7] sm:$0xff]  ;;  %s294_s10 = scalar_lea.vmem [#allocation8], %s598_s28  ;;  %s480_s11 = scalar_lea.hbm %s1106_s5, %s608_s15 }
  0x6c   : > { %414 = vmatprep.subr.mxu1 %v302_v3  ;;  %341 = vmatpush1.msra.mxu0 %v306_v4  ;;  %v299_v9 = vld [vmem:[%s250_s17] sm:$0xff]  ;;  %s482_s26 = sshll.u32 %s294_s10, 4  ;;  %s468_s9 = scalar_lea.sflag [#allocation4], %s1042_s27  ;;  %s483_s26 = int_to_ptr.vmem [resolvable:$true] %s482_s26 }
  0x6d   : > { %415 = vmatpush1.msra.mxu1 %v301_v5  ;;  %v303_v10 = vld [vmem:[#allocation7] sm:$0xff]  ;;  %342 = vmatprep.subr.mxu0 %v305_v6  ;;  %s759_s25 = scalar_lea.vmem %s483_s26, 256  ;;  %p1126_p9 = scmp.ne.s32.totalorder %s1115_s30, 0 }
  0x6e   : > { %416 = vmatprep.subr.mxu1 %v300_v7  ;;  %v298_v11 = vld [vmem:[%s1103_s2] sm:$0xff]  ;;  %343 = vmatpush1.msra.mxu0 %v304_v8  ;;  %p760_p7 = scmp.ne.s32.totalorder %s483_s26, %s759_s25  ;;  %s841_s8 = smov [#allocation8]  }
  0x6f   : > { %v457_v12 = vld [vmem:[%s1105_s4] sm:$0xff]  ;;  %417 = vmatpush1.msra.mxu1 %v299_v9  ;;  %599 = vmatmul.mubr.msk.f32.vlgmr.msra.gmra.mxu0 %vm308_vm0, %v303_v10  ;;  %s763_s22 = sshll.u32 %s841_s8, 4  ;;  %s764_s22 = int_to_ptr.vmem [resolvable:$false] %s763_s22 }
  0x70   : > { %600 = vmatmul.mubr.msk.f32.vlgmr.msra.gmra.mxu1 %vm308_vm0, %v298_v11  ;;  %460 = vperm.xlu0 %676, %v457_v12   ;;  %p761_p10 = pnand %p760_p7, %p1126_p9  ;;  %s765_s17 = scalar_lea.vmem %s764_s22, 512 }
  0x71   : > { %p766_p0 = scmp.lt.s32.totalorder %s483_s26, %s764_s22  ;;  %p767_p4 = scmp.lt.s32.totalorder %s765_s17, %s759_s25 }
  0x72   : > { %p762_p2 = pneg %p761_p10 }
  0x73   : > { %p768_p11 = por %p767_p4, %p766_p0 }
  0x75   : > { %p769_p1 = pnand %p768_p11, %p762_p2 }
  0xeb   : > { %v461_v13 = vpop.permute.xlu0 %460 }
 0x12f   : > { %v378_v14 = vpop.f32.mrf.mxu0 }
 0x130   : > { %v452_v15 = vpop.f32.mrf.mxu1 }
 0x131   : > { %v453_v16 = vadd.f32 %v452_v15, %v378_v14  ;;  %v380_v17 = vpop.f32.mrf.mxu0 }
 0x132   : > { %v454_v18 = vpop.f32.mrf.mxu1 }
 0x133   : > { %v463_v19 = vadd.f32 %v461_v13, %v453_v16  ;;  %v455_v20 = vadd.f32 %v454_v18, %v380_v17 }
 0x135   : > { %465 = vst [vmem:[%s294_s10] sm:$0xff] %v463_v19  ;;  %v464_v21 = vadd.f32 %v461_v13, %v455_v20 }
 0x137   : > { %466 = vst [vmem:[%s294_s10 + $0x8] sm:$0xff] %v464_v21 }
 0x138   : > { %772 = shalt.err (!%p769_p1)
}
 0x139   : > { %s773_s3 = scalar_lea.hbm %s480_s11, 256  ;;  %s777_s7 = scalar_lea.hbm %s1106_s5, 512 }
 0x13a   : > { %p774_p6 = scmp.ne.s32.totalorder %s480_s11, %s773_s3  ;;  %p778_p5 = scmp.lt.s32.totalorder %s480_s11, %s1106_s5 }
 0x13b   : > { %p779_p13 = scmp.lt.s32.totalorder %s777_s7, %s773_s3 }
 0x13c   : > { %p775_p12 = pnand %p774_p6, %p1126_p9 }
 0x13d   : > { %p780_p3 = por %p779_p13, %p778_p5 }
 0x13e   : > { %p776_p8 = pneg %p775_p12 }
 0x140   : > { %p781_p7 = pnand %p780_p3, %p776_p8 }
 0x142   : > { %784 = shalt.err (!%p781_p7)
}
 0x143   : > { %617 = dma.vmem_to_hbm [thread:$0]  (%p1126_p9), %s483_s26, 256, %s480_s11, %s468_s9  }
 0x144 PF: > { %s494_s16 = sand.u32 1, %s819_s18   ;;  %p1127_p10 = scmp.ne.s32.totalorder %s1116_s6, 0 }
 0x145   : > { %p1128_p2 = scmp.ge.s32.totalorder %s831_s21, 2  ;;  %s495_s23 = scalar_lea.sflag [#allocation4], %s494_s16 }
 0x147   : > { %p631_p0 = pnand %p1128_p2, %p1127_p10 }
 0x149   : > { %p632_p4 = pneg %p631_p0 }
 0x14b   : > { %814 = dma.done.wait (%p632_p4), %s495_s23, 256  }
 0x14c   : > { %816 = vsyncadd (%p632_p4), %s495_s23, 4294967040  ;;  %s1129_s28 = sld [smem:[#allocation13_spill]]  ;;  %p21_p11 = scmp.ge.s32.totalorder %s897_s24, 4  }
 0x14d   : > { %s1130_s18 = smov %s823_s19  ;;  %s1131_s19 = smov %s827_s20 }
 0x14e   : > { %s1133_s21 = smov %s897_s24  ;;  %23 = sbr.rel (!%p21_p11) target bundleno = 10 (0xa), region = 102 }
 0x152   : > { %s1132_s20 = smov %s1129_s28 }
 0x153   :  { %500 = vsyncpa [#allocation3], 1 }
 0x154   :  { %502 = vsyncpa [#allocation3 + $0x1], 1 }
 0x155   :  { %503 = vsyncpa [#allocation6], 1 }
 0x156   :  { %505 = vsyncpa [#allocation6 + $0x1], 1 }
 0x157   :  { %506 = vsyncpa [#allocation4], 1 }
 0x158   :  { %508 = vsyncpa [#allocation4 + $0x1], 1 }

</bundles_post_ra>
